<compile_context>
chip_gen: v7x
topology: tpu7x:2x2x1
jax: 0.10.0
libtpu: 0.0.40
codegen_flags: <defaults>
</compile_context>

<pallas_src>
import functools

import jax
import jax.numpy as jnp
from jax.experimental import pallas as pl
from jax.experimental.pallas import tpu as pltpu

# ----------------------------- cfg constants --------------------------------
HI_OVERLAP_ROI_TRAIN = 0.5
NUM_SAMPLES_ROI_TRAIN = 16
FG_FRACTION_ROI_TRAIN = 0.25
MASK_OUT = 28
_EPS = 1e-6
_LANE = 128


# ------------------------- kernel 1: IoU + argmax ----------------------------
def _iou_match_kernel(prop_t_ref, gt_ref, ov_ref, idx_ref):
    p = prop_t_ref[...]                       # (B, 4, Np)  -- Np on the lane axis
    g = gt_ref[...]                           # (B, G, 4)
    px1, py1 = p[:, 0:1, :], p[:, 1:2, :]     # (B, 1, Np)
    px2, py2 = p[:, 2:3, :], p[:, 3:4, :]
    gx1, gy1 = g[:, :, 0:1], g[:, :, 1:2]     # (B, G, 1)
    gx2, gy2 = g[:, :, 2:3], g[:, :, 3:4]

    iw = jnp.maximum(jnp.minimum(px2, gx2) - jnp.maximum(px1, gx1), 0.0)
    ih = jnp.maximum(jnp.minimum(py2, gy2) - jnp.maximum(py1, gy1), 0.0)
    inter = iw * ih                                                   # (B, G, Np)
    area_p = (px2 - px1) * (py2 - py1)                                # (B, 1, Np)
    area_g = (gx2 - gx1) * (gy2 - gy1)                                # (B, G, 1)
    denom = area_p + area_g - inter + _EPS
    # divide -> EUP reciprocal + VPU multiply (frees the VALU slot)
    iou = inter * pl.reciprocal(denom, approx=True)                   # (B, G, Np)

    max_v = jnp.max(iou, axis=1, keepdims=True)                       # (B, 1, Np)
    row = jax.lax.broadcasted_iota(jnp.int32, iou.shape, 1)
    # first GT index achieving the max (matches torch.max tie behavior)
    idx = jnp.min(jnp.where(iou >= max_v, row, jnp.int32(2 ** 30)), axis=1)

    ov_ref[...] = max_v[:, 0, :]                                      # (B, Np)
    idx_ref[...] = idx                                                # (B, Np)


def iou_match(proposals, gt_bboxes):
    B, N, _ = proposals.shape
    G = gt_bboxes.shape[1]
    Np = pl.cdiv(N, _LANE) * _LANE                       # lane-dense output width
    prop_t = jnp.transpose(proposals, (0, 2, 1))         # (B, 4, N)
    if Np != N:
        # zero boxes -> IoU 0; padded columns are sliced off below
        prop_t = jnp.pad(prop_t, ((0, 0), (0, 0), (0, Np - N)))
    ov, idx = pl.pallas_call(
        _iou_match_kernel,
        out_shape=(jax.ShapeDtypeStruct((B, Np), jnp.float32),
                   jax.ShapeDtypeStruct((B, Np), jnp.int32)),
        grid=(1,),                                        # whole batch in one step
        in_specs=[pl.BlockSpec((B, 4, Np), lambda i: (0, 0, 0)),
                  pl.BlockSpec((B, G, 4), lambda i: (0, 0, 0))],
        out_specs=(pl.BlockSpec((B, Np), lambda i: (0, 0)),
                   pl.BlockSpec((B, Np), lambda i: (0, 0))),
        compiler_params=pltpu.CompilerParams(dimension_semantics=("arbitrary",)),
    )(prop_t, gt_bboxes)
    return ov[:, :N], idx[:, :N]


# ---------------- bbox2reg + intersection (plain JAX, fused by XLA) ----------
def bbox2reg_intersection(p, g):
    px1, py1, px2, py2 = p[..., 0], p[..., 1], p[..., 2], p[..., 3]
    gx1, gy1, gx2, gy2 = g[..., 0], g[..., 1], g[..., 2], g[..., 3]

    pw = jnp.maximum(px2 - px1, _EPS)
    ph = jnp.maximum(py2 - py1, _EPS)
    gw = jnp.maximum(gx2 - gx1, _EPS)
    gh = jnp.maximum(gy2 - gy1, _EPS)
    pcx = px1 + 0.5 * pw
    pcy = py1 + 0.5 * ph
    gcx = gx1 + 0.5 * gw
    gcy = gy1 + 0.5 * gh

    dx = (gcx - pcx) / pw
    dy = (gcy - pcy) / ph
    dw = jnp.log(gw / pw)
    dh = jnp.log(gh / ph)
    reg = jnp.stack([dx, dy, dw, dh], axis=-1)

    inter = jnp.stack([jnp.maximum(px1, gx1), jnp.maximum(py1, gy1),
                       jnp.minimum(px2, gx2), jnp.minimum(py2, gy2)], axis=-1)
    return reg, inter


# ------------------ kernel 2: roi_align via separable matmuls ----------------
def _roi_align_kernel(idx_ref, wy_ref, wxt_ref, m_ref, o_ref):
    # idx_ref: SMEM (R,) int32 (used only by the mask index_map)
    # wy_ref: (1, 28, H) f32; wxt_ref: (1, W, 28) f32; m_ref: (1, H, W) f32
    # out[py, px] = sum_{y,x} Wy[py, y] * mask[y, x] * Wx[px, x]
    # x-first: the large matmul (H,W)x(W,28) streams H rows per weight tile.
    tmp = jnp.dot(m_ref[0], wxt_ref[0], preferred_element_type=jnp.float32)   # (H, 28)
    out = jnp.dot(wy_ref[0], tmp, preferred_element_type=jnp.float32)         # (28, 28)
    o_ref[0] = jnp.round(out).astype(jnp.int32)


def roi_align_pallas(flat_idx, Wy, Wx_t, masks_flat):
    # flat_idx: (R,) int32 gather indices into masks_flat's leading dim
    # Wy: (R, 28, H) f32; Wx_t: (R, W, 28) f32; masks_flat: (B*G, H, W) f32
    R, S, H = Wy.shape
    W = masks_flat.shape[2]
    return pl.pallas_call(
        _roi_align_kernel,
        out_shape=jax.ShapeDtypeStruct((R, S, S), jnp.int32),
        grid_spec=pltpu.PrefetchScalarGridSpec(
            num_scalar_prefetch=1,
            grid=(R,),                       # one ROI per step; mask read once from HBM
            in_specs=[pl.BlockSpec((1, S, H), lambda r, idx: (r, 0, 0)),
                      pl.BlockSpec((1, W, S), lambda r, idx: (r, 0, 0)),
                      pl.BlockSpec((1, H, W), lambda r, idx: (idx[r], 0, 0))],
            out_specs=pl.BlockSpec((1, S, S), lambda r, idx: (r, 0, 0)),
        ),
        compiler_params=pltpu.CompilerParams(
            dimension_semantics=("arbitrary",),
            vmem_limit_bytes=32 << 20,       # safe on v5e/v6e/v7x, headroom for big masks
        ),
    )(flat_idx, Wy, Wx_t, masks_flat)


# ------------------- roi_align interpolation matrices (glue) -----------------
def _interp_matrix(start, size, nbins, dim):
    """Bilinear interpolation matrix (R, nbins, dim), sampling_ratio=1, aligned=False."""
    bin_sz = size / nbins
    coords = start[:, None] + (jnp.arange(nbins, dtype=jnp.float32)[None, :] + 0.5) * bin_sz[:, None]
    valid = (coords >= -1.0) & (coords <= float(dim))
    c = jnp.clip(coords, 0.0, float(dim - 1))
    low = jnp.floor(c)
    low = jnp.minimum(low, float(dim - 1))
    high = jnp.minimum(low + 1.0, float(dim - 1))
    frac = c - low
    grid = jnp.arange(dim, dtype=jnp.float32)[None, None, :]
    w = ((1.0 - frac)[..., None] * (grid == low[..., None]) +
         frac[..., None] * (grid == high[..., None]))
    return jnp.where(valid[..., None], w, 0.0).astype(jnp.float32)


def get_masks_target(gt_masks, gt_match, intersection):
    # gt_masks: (B, G, H, W) f32; gt_match: (B, K) int; intersection: (B, K, 4)
    B, G, H, W = gt_masks.shape
    K = gt_match.shape[1]
    R = B * K
    masks_flat = gt_masks.reshape(B * G, H, W)            # metadata-only reshape
    flat_idx = (jnp.arange(B, dtype=jnp.int32)[:, None] * G
                + gt_match.astype(jnp.int32)).reshape(R)  # (R,) gather indices
    box = intersection.reshape(R, 4)
    x1, y1, x2, y2 = box[:, 0], box[:, 1], box[:, 2], box[:, 3]
    roi_w = jnp.maximum(x2 - x1, 1.0)
    roi_h = jnp.maximum(y2 - y1, 1.0)
    # TODO(synk): torchvision roi_align default uses adaptive sampling_ratio;
    #             this implements sampling_ratio=1 (one bilinear sample per bin).
    # TODO(synk): Wy/Wx could be built in-kernel from 4 prefetched scalars per
    #             ROI to drop two HBM streams; kept in glue for clarity.
    Wx = _interp_matrix(x1, roi_w, MASK_OUT, W)           # (R, 28, W) f32
    Wy = _interp_matrix(y1, roi_h, MASK_OUT, H)           # (R, 28, H) f32
    Wx_t = jnp.swapaxes(Wx, 1, 2)                         # (R, W, 28) pre-transposed
    out = roi_align_pallas(flat_idx, Wy, Wx_t, masks_flat)  # (R, 28, 28) int32
    return out.reshape(B, K, MASK_OUT, MASK_OUT)


# ----------------------------- forward (module) ------------------------------
@functools.partial(jax.jit, static_argnames=())
def proposal_target_creator(proposals, gt_labels, gt_bboxes, gt_masks):
    B, N, _ = proposals.shape

    overlap, index_gt = iou_match(proposals, gt_bboxes)   # (B, N), (B, N)

    num_fg = int(NUM_SAMPLES_ROI_TRAIN * FG_FRACTION_ROI_TRAIN)
    num_bg = NUM_SAMPLES_ROI_TRAIN - num_fg

    # TODO(synk): the PyTorch module uses python `shuffle` and data-dependent
    #             fg/bg counts; with static shapes we select deterministically:
    #             top-`num_fg` by overlap among fg, lowest-overlap `num_bg` as bg.
    fg_key = jnp.where(overlap >= HI_OVERLAP_ROI_TRAIN, overlap, -jnp.inf)
    keep_fg = jnp.argsort(-fg_key, axis=1)[:, :num_fg]            # (B, num_fg)
    bg_key = jnp.where(overlap < HI_OVERLAP_ROI_TRAIN, overlap, jnp.inf)
    keep_bg = jnp.argsort(bg_key, axis=1)[:, :num_bg]             # (B, num_bg)

    bidx = jnp.arange(B)[:, None]
    prop_pos = proposals[bidx, keep_fg]                           # (B, num_fg, 4)
    prop_neg = proposals[bidx, keep_bg]                           # (B, num_bg, 4)
    gt_match = index_gt[bidx, keep_fg]                            # (B, num_fg)
    gt_pos = gt_bboxes[bidx, gt_match]                            # (B, num_fg, 4)
    labels_pos = gt_labels[bidx, gt_match].astype(jnp.uint8)      # (B, num_fg)
    labels_neg = jnp.zeros((B, num_bg), dtype=jnp.uint8)

    proposals_batch = jnp.concatenate([prop_pos, prop_neg], axis=1)   # (B, S, 4)
    labels_batch = jnp.concatenate([labels_pos, labels_neg], axis=1)  # (B, S) uint8

    # tiny elementwise math: plain JAX (fuses with the gathers above)
    reg, intersection = bbox2reg_intersection(prop_pos, gt_pos)   # (B, num_fg, 4) each

    # masks are gathered inside the Pallas kernel (scalar-prefetch index_map),
    # so gt_masks goes in untouched -- no XLA gather/cast HBM round-trip.
    masks_target = get_masks_target(gt_masks, gt_match, intersection)  # (B, num_fg, 28, 28)

    return proposals_batch, labels_batch, reg, masks_target


# --------------------------------- main --------------------------------------
if __name__ == "__main__":
    key = jax.random.PRNGKey(0)
    B, N, G, IMG = 2, 64, 8, 64
    k1, k2, k3, k4, k5, k6, k7, k8 = jax.random.split(key, 8)

    # ground-truth boxes
    cx = jax.random.uniform(k1, (B, G), minval=16.0, maxval=48.0)
    cy = jax.random.uniform(k2, (B, G), minval=16.0, maxval=48.0)
    gw = jax.random.uniform(k3, (B, G), minval=8.0, maxval=24.0)
    gh = jax.random.uniform(k4, (B, G), minval=8.0, maxval=24.0)
    gt_bboxes = jnp.stack([cx - gw / 2, cy - gh / 2, cx + gw / 2, cy + gh / 2],
                          axis=-1).astype(jnp.float32)           # (B, G, 4)
    gt_labels = jax.random.randint(k5, (B, G), 1, 6).astype(jnp.uint8)
    gt_masks = (jax.random.uniform(k6, (B, G, IMG, IMG)) > 0.5).astype(jnp.float32)

    # proposals: half jittered GT boxes (foreground-ish), half random boxes
    n_fg_like = N // 2
    base = jnp.tile(gt_bboxes, (1, n_fg_like // G, 1))            # (B, 32, 4)
    jitter = jax.random.uniform(k7, (B, n_fg_like, 4), minval=-2.0, maxval=2.0)
    prop_fg_like = base + jitter

    rx1 = jax.random.uniform(k8, (B, N - n_fg_like), minval=0.0, maxval=48.0)
    ry1 = jax.random.uniform(jax.random.fold_in(k8, 1), (B, N - n_fg_like),
                             minval=0.0, maxval=48.0)
    rw = jax.random.uniform(jax.random.fold_in(k8, 2), (B, N - n_fg_like),
                            minval=4.0, maxval=14.0)
    rh = jax.random.uniform(jax.random.fold_in(k8, 3), (B, N - n_fg_like),
                            minval=4.0, maxval=14.0)
    prop_rand = jnp.stack([rx1, ry1, rx1 + rw, ry1 + rh], axis=-1)

    proposals = jnp.concatenate([prop_fg_like, prop_rand], axis=1).astype(jnp.float32)

    props_b, labels_b, reg_b, masks_b = proposal_target_creator(
        proposals, gt_labels, gt_bboxes, gt_masks)

    jax.block_until_ready((props_b, labels_b, reg_b, masks_b))

    # lists per batch element (matching the module's reg_list / masks_target_list)
    reg_list = [reg_b[i] for i in range(B)]
    masks_target_list = [masks_b[i] for i in range(B)]

    assert props_b.shape == (B, NUM_SAMPLES_ROI_TRAIN, 4)
    assert labels_b.shape == (B, NUM_SAMPLES_ROI_TRAIN) and labels_b.dtype == jnp.uint8
    assert reg_list[0].shape == (int(NUM_SAMPLES_ROI_TRAIN * FG_FRACTION_ROI_TRAIN), 4)
    assert masks_target_list[0].shape == (
        int(NUM_SAMPLES_ROI_TRAIN * FG_FRACTION_ROI_TRAIN), MASK_OUT, MASK_OUT)
    assert masks_target_list[0].dtype == jnp.int32

    print("KERNEL_OK")
</pallas_src>

<mosaic_0001>
module attributes {stable_mosaic.version = 11 : i64} {
  func.func @_iou_match_kernel(%arg0: i32, %arg1: memref<2x4x128xf32, #tpu.memory_space<vmem>>, %arg2: memref<2x8x4xf32, #tpu.memory_space<vmem>>, %arg3: memref<2x128xf32, #tpu.memory_space<vmem>>, %arg4: memref<2x128xi32, #tpu.memory_space<vmem>>) attributes {dimension_semantics = [#tpu.dimension_semantics<arbitrary>], iteration_bounds = array<i64: 1>, scalar_prefetch = 0 : i64, scratch_operands = 0 : i64, tpu.core_type = #tpu.core_type<tc>, window_params = [{pipeline_mode = #tpu.pipeline_mode<synchronous>, transform_indices = @transform_0, window_bounds = array<i64: 2, 4, 128>}, {pipeline_mode = #tpu.pipeline_mode<synchronous>, transform_indices = @transform_1, window_bounds = array<i64: 2, 8, 4>}, {pipeline_mode = #tpu.pipeline_mode<synchronous>, transform_indices = @transform_2, window_bounds = array<i64: 2, 128>}, {pipeline_mode = #tpu.pipeline_mode<synchronous>, transform_indices = @transform_3, window_bounds = array<i64: 2, 128>}]} {
    %c0 = arith.constant 0 : index
    %c0_0 = arith.constant 0 : index
    %c0_1 = arith.constant 0 : index
    %0 = vector.load %arg1[%c0, %c0_0, %c0_1] : memref<2x4x128xf32, #tpu.memory_space<vmem>>, vector<2x4x128xf32>
    %c0_2 = arith.constant 0 : index
    %c0_3 = arith.constant 0 : index
    %c0_4 = arith.constant 0 : index
    %1 = vector.load %arg2[%c0_2, %c0_3, %c0_4] : memref<2x8x4xf32, #tpu.memory_space<vmem>>, vector<2x8x4xf32>
    %2 = vector.extract_strided_slice %0 {offsets = [0, 0, 0], sizes = [2, 1, 128], strides = [1, 1, 1]} : vector<2x4x128xf32> to vector<2x1x128xf32>
    %3 = vector.extract_strided_slice %0 {offsets = [0, 1, 0], sizes = [2, 1, 128], strides = [1, 1, 1]} : vector<2x4x128xf32> to vector<2x1x128xf32>
    %4 = vector.extract_strided_slice %0 {offsets = [0, 2, 0], sizes = [2, 1, 128], strides = [1, 1, 1]} : vector<2x4x128xf32> to vector<2x1x128xf32>
    %5 = vector.extract_strided_slice %0 {offsets = [0, 3, 0], sizes = [2, 1, 128], strides = [1, 1, 1]} : vector<2x4x128xf32> to vector<2x1x128xf32>
    %6 = vector.extract_strided_slice %1 {offsets = [0, 0, 0], sizes = [2, 8, 1], strides = [1, 1, 1]} : vector<2x8x4xf32> to vector<2x8x1xf32>
    %7 = vector.extract_strided_slice %1 {offsets = [0, 0, 1], sizes = [2, 8, 1], strides = [1, 1, 1]} : vector<2x8x4xf32> to vector<2x8x1xf32>
    %8 = vector.extract_strided_slice %1 {offsets = [0, 0, 2], sizes = [2, 8, 1], strides = [1, 1, 1]} : vector<2x8x4xf32> to vector<2x8x1xf32>
    %9 = vector.extract_strided_slice %1 {offsets = [0, 0, 3], sizes = [2, 8, 1], strides = [1, 1, 1]} : vector<2x8x4xf32> to vector<2x8x1xf32>
    %10 = vector.broadcast %4 : vector<2x1x128xf32> to vector<2x8x128xf32>
    %11 = vector.broadcast %8 : vector<2x8x1xf32> to vector<2x8x128xf32>
    %12 = arith.minimumf %10, %11 : vector<2x8x128xf32>
    %13 = vector.broadcast %2 : vector<2x1x128xf32> to vector<2x8x128xf32>
    %14 = vector.broadcast %6 : vector<2x8x1xf32> to vector<2x8x128xf32>
    %15 = arith.maximumf %13, %14 : vector<2x8x128xf32>
    %16 = arith.subf %12, %15 : vector<2x8x128xf32>
    %cst = arith.constant 0.000000e+00 : f32
    %17 = vector.broadcast %cst : f32 to vector<2x8x128xf32>
    %18 = arith.maximumf %16, %17 : vector<2x8x128xf32>
    %19 = vector.broadcast %5 : vector<2x1x128xf32> to vector<2x8x128xf32>
    %20 = vector.broadcast %9 : vector<2x8x1xf32> to vector<2x8x128xf32>
    %21 = arith.minimumf %19, %20 : vector<2x8x128xf32>
    %22 = vector.broadcast %3 : vector<2x1x128xf32> to vector<2x8x128xf32>
    %23 = vector.broadcast %7 : vector<2x8x1xf32> to vector<2x8x128xf32>
    %24 = arith.maximumf %22, %23 : vector<2x8x128xf32>
    %25 = arith.subf %21, %24 : vector<2x8x128xf32>
    %cst_5 = arith.constant 0.000000e+00 : f32
    %26 = vector.broadcast %cst_5 : f32 to vector<2x8x128xf32>
    %27 = arith.maximumf %25, %26 : vector<2x8x128xf32>
    %28 = arith.mulf %18, %27 : vector<2x8x128xf32>
    %29 = arith.subf %4, %2 : vector<2x1x128xf32>
    %30 = arith.subf %5, %3 : vector<2x1x128xf32>
    %31 = arith.mulf %29, %30 : vector<2x1x128xf32>
    %32 = arith.subf %8, %6 : vector<2x8x1xf32>
    %33 = arith.subf %9, %7 : vector<2x8x1xf32>
    %34 = arith.mulf %32, %33 : vector<2x8x1xf32>
    %35 = vector.broadcast %31 : vector<2x1x128xf32> to vector<2x8x128xf32>
    %36 = vector.broadcast %34 : vector<2x8x1xf32> to vector<2x8x128xf32>
    %37 = arith.addf %35, %36 : vector<2x8x128xf32>
    %38 = arith.subf %37, %28 : vector<2x8x128xf32>
    %cst_6 = arith.constant 9.99999997E-7 : f32
    %39 = vector.broadcast %cst_6 : f32 to vector<2x8x128xf32>
    %40 = arith.addf %38, %39 : vector<2x8x128xf32>
    %41 = tpu.reciprocal %40 {approx = true} : vector<2x8x128xf32> -> vector<2x8x128xf32>
    %42 = arith.mulf %28, %41 : vector<2x8x128xf32>
    %cst_7 = arith.constant dense<0xFF800000> : vector<2x128xf32>
    %43 = vector.multi_reduction <maximumf>, %42, %cst_7 [1] : vector<2x8x128xf32> to vector<2x128xf32>
    %44 = vector.shape_cast %43 : vector<2x128xf32> to vector<2x1x128xf32>
    %45 = tpu.iota {dimensions = array<i32: 1>} : vector<2x8x128xi32>
    %46 = vector.broadcast %44 : vector<2x1x128xf32> to vector<2x8x128xf32>
    %47 = arith.cmpf oge, %42, %46 : vector<2x8x128xf32>
    %c1073741824_i32 = arith.constant 1073741824 : i32
    %48 = vector.broadcast %c1073741824_i32 : i32 to vector<2x8x128xi32>
    %49 = arith.select %47, %45, %48 : vector<2x8x128xi1>, vector<2x8x128xi32>
    %cst_8 = arith.constant dense<2147483647> : vector<2x128xi32>
    %50 = vector.multi_reduction <minsi>, %49, %cst_8 [1] : vector<2x8x128xi32> to vector<2x128xi32>
    %51 = vector.shape_cast %44 : vector<2x1x128xf32> to vector<2x128xf32>
    %c0_9 = arith.constant 0 : index
    %c0_10 = arith.constant 0 : index
    %52 = vector.load %arg3[%c0_9, %c0_10] : memref<2x128xf32, #tpu.memory_space<vmem>>, vector<2x128xf32>
    tpu.vector_store %arg3[%c0_9, %c0_10], %51 {strides = array<i32>} : memref<2x128xf32, #tpu.memory_space<vmem>>, vector<2x128xf32>,
    %c0_11 = arith.constant 0 : index
    %c0_12 = arith.constant 0 : index
    %53 = vector.load %arg4[%c0_11, %c0_12] : memref<2x128xi32, #tpu.memory_space<vmem>>, vector<2x128xi32>
    tpu.vector_store %arg4[%c0_11, %c0_12], %50 {strides = array<i32>} : memref<2x128xi32, #tpu.memory_space<vmem>>, vector<2x128xi32>,
    return
  }
  func.func @transform_0(%arg0: i32) -> (i32, i32, i32) {
    %c0_i32 = arith.constant 0 : i32
    %c0_i32_0 = arith.constant 0 : i32
    %c0_i32_1 = arith.constant 0 : i32
    %c0_i32_2 = arith.constant 0 : i32
    return %c0_i32, %c0_i32_0, %c0_i32_1 : i32, i32, i32
  }
  func.func @transform_1(%arg0: i32) -> (i32, i32, i32) {
    %c0_i32 = arith.constant 0 : i32
    %c0_i32_0 = arith.constant 0 : i32
    %c0_i32_1 = arith.constant 0 : i32
    %c0_i32_2 = arith.constant 0 : i32
    return %c0_i32, %c0_i32_0, %c0_i32_1 : i32, i32, i32
  }
  func.func @transform_2(%arg0: i32) -> (i32, i32) {
    %c0_i32 = arith.constant 0 : i32
    %c0_i32_0 = arith.constant 0 : i32
    %c0_i32_1 = arith.constant 0 : i32
    return %c0_i32, %c0_i32_0 : i32, i32
  }
  func.func @transform_3(%arg0: i32) -> (i32, i32) {
    %c0_i32 = arith.constant 0 : i32
    %c0_i32_0 = arith.constant 0 : i32
    %c0_i32_1 = arith.constant 0 : i32
    return %c0_i32, %c0_i32_0 : i32, i32
  }
}

module attributes {stable_mosaic.version = 11 : i64} {
  func.func @_roi_align_kernel(%arg0: i32, %arg1: memref<8xi32, #tpu.memory_space<smem>>, %arg2: memref<1x28x64xf32, #tpu.memory_space<vmem>>, %arg3: memref<1x64x28xf32, #tpu.memory_space<vmem>>, %arg4: memref<1x64x64xf32, #tpu.memory_space<vmem>>, %arg5: memref<1x28x28xi32, #tpu.memory_space<vmem>>) attributes {dimension_semantics = [#tpu.dimension_semantics<arbitrary>], iteration_bounds = array<i64: 8>, scalar_prefetch = 1 : i64, scratch_operands = 0 : i64, tpu.core_type = #tpu.core_type<tc>, window_params = [{transform_indices = @transform_0, window_bounds = array<i64: 1, 28, 64>}, {transform_indices = @transform_1, window_bounds = array<i64: 1, 64, 28>}, {transform_indices = @transform_2, window_bounds = array<i64: 1, 64, 64>}, {transform_indices = @transform_3, window_bounds = array<i64: 1, 28, 28>}]} {
    %c0 = arith.constant 0 : index
    %c0_0 = arith.constant 0 : index
    %c0_1 = arith.constant 0 : index
    %0 = vector.load %arg4[%c0, %c0_0, %c0_1] : memref<1x64x64xf32, #tpu.memory_space<vmem>>, vector<1x64x64xf32>
    %1 = vector.shape_cast %0 : vector<1x64x64xf32> to vector<64x64xf32>
    %c0_2 = arith.constant 0 : index
    %c0_3 = arith.constant 0 : index
    %c0_4 = arith.constant 0 : index
    %2 = vector.load %arg3[%c0_2, %c0_3, %c0_4] : memref<1x64x28xf32, #tpu.memory_space<vmem>>, vector<1x64x28xf32>
    %3 = vector.shape_cast %2 : vector<1x64x28xf32> to vector<64x28xf32>
    %cst = arith.constant dense<0.000000e+00> : vector<64x28xf32>
    %4 = tpu.matmul %1, %3, %cst {dimension_numbers = #tpu.dot_dimension_numbers<[1], [0], [0], [1], [0, 0, 1, 1], [], []>} : vector<64x64xf32>, vector<64x28xf32>, vector<64x28xf32> -> vector<64x28xf32>
    %c0_5 = arith.constant 0 : index
    %c0_6 = arith.constant 0 : index
    %c0_7 = arith.constant 0 : index
    %5 = vector.load %arg2[%c0_5, %c0_6, %c0_7] : memref<1x28x64xf32, #tpu.memory_space<vmem>>, vector<1x28x64xf32>
    %6 = vector.shape_cast %5 : vector<1x28x64xf32> to vector<28x64xf32>
    %cst_8 = arith.constant dense<0.000000e+00> : vector<28x28xf32>
    %7 = tpu.matmul %6, %4, %cst_8 {dimension_numbers = #tpu.dot_dimension_numbers<[1], [0], [0], [1], [0, 0, 1, 1], [], []>} : vector<28x64xf32>, vector<64x28xf32>, vector<28x28xf32> -> vector<28x28xf32>
    %8 = math.roundeven %7 : vector<28x28xf32>
    %9 = arith.fptosi %8 : vector<28x28xf32> to vector<28x28xi32>
    %c0_9 = arith.constant 0 : index
    %c0_10 = arith.constant 0 : index
    %c0_11 = arith.constant 0 : index
    %10 = vector.load %arg5[%c0_9, %c0_10, %c0_11] : memref<1x28x28xi32, #tpu.memory_space<vmem>>, vector<1x28x28xi32>
    %11 = vector.shape_cast %10 : vector<1x28x28xi32> to vector<28x28xi32>
    %12 = vector.shape_cast %9 : vector<28x28xi32> to vector<1x28x28xi32>
    tpu.vector_store %arg5[%c0_9, %c0_10, %c0_11], %12 {strides = array<i32>} : memref<1x28x28xi32, #tpu.memory_space<vmem>>, vector<1x28x28xi32>,
    return
  }
  func.func @transform_0(%arg0: i32, %arg1: memref<8xi32, #tpu.memory_space<smem>>) -> (i32, i32, i32) {
    %c0_i32 = arith.constant 0 : i32
    %c0_i32_0 = arith.constant 0 : i32
    %c0_i32_1 = arith.constant 0 : i32
    return %arg0, %c0_i32, %c0_i32_0 : i32, i32, i32
  }
  func.func @transform_1(%arg0: i32, %arg1: memref<8xi32, #tpu.memory_space<smem>>) -> (i32, i32, i32) {
    %c0_i32 = arith.constant 0 : i32
    %c0_i32_0 = arith.constant 0 : i32
    %c0_i32_1 = arith.constant 0 : i32
    return %arg0, %c0_i32, %c0_i32_0 : i32, i32, i32
  }
  func.func @transform_2(%arg0: i32, %arg1: memref<8xi32, #tpu.memory_space<smem>>) -> (i32, i32, i32) {
    %0 = arith.index_cast %arg0 : i32 to index
    %1 = memref.load %arg1[%0] : memref<8xi32, #tpu.memory_space<smem>>
    %c0_i32 = arith.constant 0 : i32
    %c0_i32_0 = arith.constant 0 : i32
    %c0_i32_1 = arith.constant 0 : i32
    return %1, %c0_i32, %c0_i32_0 : i32, i32, i32
  }
  func.func @transform_3(%arg0: i32, %arg1: memref<8xi32, #tpu.memory_space<smem>>) -> (i32, i32, i32) {
    %c0_i32 = arith.constant 0 : i32
    %c0_i32_0 = arith.constant 0 : i32
    %c0_i32_1 = arith.constant 0 : i32
    return %arg0, %c0_i32, %c0_i32_0 : i32, i32, i32
  }
}

</mosaic_0001>

<bundles_post_ra>
// kernel: proposal_target_creator.2
= control target key start
LH: loop header
LB: loop body
LE: loop exit
PB: predicated region body
PF: predicated region fallthrough
CT: control target
= control target key end

     0   :  { %v234_v1 = vmov 2   ;;  %s235_s14 = smov 2   ;;  %v236_v3 = vmov 0   ;;  %v237_v4 = vmov 1   ;;  %s238_s17 = smov 127   ;;  %v239_v9 = vmov 3   ;;  %s288_s1 = inlined_call_operand.vmem [shape: f32[2,8,4], index: 1, kind: input, shape index: {}]   ;;  %s289_s0 = inlined_call_operand.vmem [shape: f32[2,4,128], index: 0, kind: input, shape index: {}]   ;;  %s290_s2 = inlined_call_operand.vmem [shape: f32[2,128], index: 2, kind: output, shape index: {0}]   ;;  %s291_s3 = inlined_call_operand.vmem [shape: s32[2,128], index: 3, kind: output, shape index: {1}]  }
   0x1   :  { %v15_v0 = vld [vmem:[%s288_s1] sm:$0xff]  ;;  %222 = vset.pattern.permute.xlu1 %v234_v1  ;;  %221 = vset.pattern.permute.xlu0 %v234_v1  ;;  %v16_v2 = vld [vmem:[%s288_s1 + $0x8] sm:$0xff]  ;;  %v17_v16 = vlaneseq  ;;  %vm201_vm1 = vcmask 1041409  }
   0x2   :  { %117 = vrot.lane.b32.xlu0 %v15_v0, %s235_s14  ;;  %v13_v20 = vld [vmem:[%s289_s0] sm:$0xf]  ;;  %v14_v24 = vld [vmem:[%s289_s0 + $0x4] sm:$0xf] }
   0x3   :  { %v266_v18 = vshrl.u32 %v17_v16, 7  ;;  %v103_v22 = vrot.slane %v13_v20, 6  ;;  %v104_v31 = vrot.slane %v14_v24, 6 }
   0x5   :  { %v19_v23 = vsub.s32 2, %v266_v18  ;;  %v39_v25 = vsub.s32 0, %v266_v18  ;;  %v61_v26 = vsub.s32 3, %v266_v18  ;;  %v79_v27 = vsub.s32 1, %v266_v18 }
   0x6   :  { %119 = vrot.lane.b32.xlu0 %v16_v2, %s235_s14  ;;  %v107_v30 = vsub.f32 %v13_v20, %v103_v22  ;;  %v108_v41 = vsub.f32 %v14_v24, %v104_v31 }
   0x7   :  { %v20_v29 = vrot.slane %v13_v20, %v19_v23  ;;  %v40_v32 = vrot.slane %v13_v20, %v39_v25  ;;  %v62_v33 = vrot.slane %v13_v20, %v61_v26  ;;  %v80_v34 = vrot.slane %v13_v20, %v79_v27 }
   0x8   :  { %v24_v36 = vrot.slane %v14_v24, %v19_v23  ;;  %v66_v37 = vrot.slane %v14_v24, %v61_v26  ;;  %v44_v39 = vrot.slane %v14_v24, %v39_v25  ;;  %v111_v40 = vrot.slane %v107_v30, 1 }
   0x9   :  { %v84_v44 = vrot.slane %v14_v24, %v79_v27  ;;  %v112_v50 = vrot.slane %v108_v41, 1 }
   0xa   :  { %27 = vperm.xlu0 %221, %v15_v0   ;;  %v115_v49 = vmul.f32 %v111_v40, %v107_v30 }
   0xb   :  { %v116_v56 = vmul.f32 %v112_v50, %v108_v41 }
   0xc   :  { %v138_v55 = vrot.slane %v115_v49, %v19_v23 }
   0xd   :  { %v142_v62 = vrot.slane %v116_v56, %v19_v23 }
   0xe   :  { %224 = vset.pattern.permute.xlu0 %v236_v3 }
   0xf   :  { %50 = vperm.xlu0 %224, %v16_v2  }
  0x13   :  { %226 = vset.pattern.permute.xlu0 %v237_v4 }
  0x14   :  { %86 = vperm.xlu0 %226, %v15_v0  }
  0x18   :  { %229 = vset.pattern.permute.xlu0 %v234_v1 }
  0x74   :  { %v118_v5 = vpop.permute.xlu0 %117 }
  0x75   :  { %v123_v6 = vsub.f32 %v15_v0, %v118_v5 }
  0x77   :  { %127 = vrot.lane.b32.xlu1 %v123_v6, %s238_s17 }
  0x78   :  { %v120_v7 = vpop.permute.xlu0 %119 }
  0x79   :  { %v124_v8 = vsub.f32 %v16_v2, %v120_v7 }
  0x7b   :  { %129 = vrot.lane.b32.xlu1 %v124_v8, %s238_s17 }
  0x7f   :  { %32 = vperm.xlu1 %222, %v16_v2  }
  0x83   :  { %223 = vset.pattern.permute.xlu1 %v236_v3 }
  0x84   :  { %46 = vperm.xlu1 %223, %v15_v0  }
  0x88   :  { %225 = vset.pattern.permute.xlu1 %v239_v9 }
  0x89   :  { %68 = vperm.xlu1 %225, %v15_v0   ;;  %v28_v17 = vpop.permute.xlu0 %27 }
  0x8a   :  { %v35_v38 = vmin.f32 %v20_v29, %v28_v17 }
  0x8d   :  { %72 = vperm.xlu1 %225, %v16_v2  }
  0x8e   :  { %v51_v21 = vpop.permute.xlu0 %50 }
  0x8f   :  { %v54_v48 = vmax.f32 %v44_v39, %v51_v21 }
  0x91   :  { %227 = vset.pattern.permute.xlu1 %v237_v4 }
  0x92   :  { %90 = vperm.xlu1 %227, %v16_v2  }
  0x93   :  { %v87_v35 = vpop.permute.xlu0 %86 }
  0x94   :  { %v93_v45 = vmax.f32 %v80_v34, %v87_v35 }
  0x96   :  { %228 = vset.pattern.permute.xlu1 %v234_v1 }
  0xe9   :  { %v128_v10 = vpop.permute.xlu1 %127 }
  0xea   :  { %v133_v11 = vmul.f32 %v128_v10, %v123_v6 }
  0xec   :  { %145 = vperm.xlu1 %228, %v133_v11  }
  0xed   :  { %v130_v12 = vpop.permute.xlu1 %129 }
  0xee   :  { %v134_v13 = vmul.f32 %v130_v12, %v124_v8 }
  0xf0   :  { %150 = vperm.xlu0 %229, %v134_v13  }
  0xfe   :  { %v33_v14 = vpop.permute.xlu1 %32 }
  0xff   :  { %v36_v47 = vmin.f32 %v24_v36, %v33_v14 }
 0x101   :  { %v56_v59 = vsub.f32 %v36_v47, %v54_v48 }
 0x103   :  { %v47_v15 = vpop.permute.xlu1 %46  ;;  %v58_v0 = vmax.f32 %v56_v59, 0.0 }
 0x104   :  { %v53_v42 = vmax.f32 %v40_v32, %v47_v15 }
 0x106   :  { %v55_v52 = vsub.f32 %v35_v38, %v53_v42 }
 0x108   :  { %v69_v19 = vpop.permute.xlu1 %68  ;;  %v57_v57 = vmax.f32 %v55_v52, 0.0 }
 0x109   :  { %v75_v43 = vmin.f32 %v62_v33, %v69_v19 }
 0x10b   :  { %v95_v54 = vsub.f32 %v75_v43, %v93_v45 }
 0x10c   :  { %v73_v28 = vpop.permute.xlu1 %72 }
 0x10d   :  { %v76_v51 = vmin.f32 %v66_v37, %v73_v28  ;;  %v97_v60 = vmax.f32 %v95_v54, 0.0 }
 0x10f   :  { %v99_v1 = vmul.f32 %v97_v60, %v57_v57 }
 0x111   :  { %v91_v46 = vpop.permute.xlu1 %90 }
 0x112   :  { %v94_v53 = vmax.f32 %v84_v44, %v91_v46 }
 0x114   :  { %v96_v58 = vsub.f32 %v76_v51, %v94_v53 }
 0x116   :  { %v98_v63 = vmax.f32 %v96_v58, 0.0 }
 0x118   :  { %v100_v6 = vmul.f32 %v98_v63, %v58_v0 }
 0x16b   :  { %v146_v61 = vpop.permute.xlu1 %145 }
 0x16c   :  { %v153_v2 = vadd.f32 %v146_v61, %v138_v55 }
 0x16e   :  { %v155_v3 = vsub.f32 %v153_v2, %v99_v1 }
 0x16f   :  { %v151_v4 = vpop.permute.xlu0 %150 }
 0x170   :  { %v157_v5 = vadd.f32 1e-06, %v155_v3  ;;  %v154_v7 = vadd.f32 %v151_v4, %v142_v62 }
 0x172   :  { %230 = vrcp.f32 %v157_v5  ;;  %v156_v8 = vsub.f32 %v154_v7, %v100_v6 }
 0x174   :  { %v158_v9 = vadd.f32 1e-06, %v156_v8 }
 0x176   :  { %232 = vrcp.f32 %v158_v9 }
 0x17c   :  { %v231_v10 = vpop.eup %230 }
 0x17d   :  { %v161_v11 = vmul.f32 %v231_v10, %v99_v1 }
 0x17f   :  { %v163_v12 = vrot.slane %v161_v11, 4 }
 0x180   :  { %v233_v13 = vpop.eup %232 }
 0x181   :  { %v164_v14 = vmax.f32 %v161_v11, %v163_v12  ;;  %v162_v15 = vmul.f32 %v233_v13, %v100_v6 }
 0x183   :  { %v165_v16 = vrot.slane %v164_v14, 2  ;;  %v169_v17 = vrot.slane %v162_v15, 4 }
 0x185   :  { %v166_v19 = vmax.f32 %v164_v14, %v165_v16  ;;  %v170_v20 = vmax.f32 %v162_v15, %v169_v17 }
 0x187   :  { %v167_v21 = vrot.slane %v166_v19, 1  ;;  %v171_v22 = vrot.slane %v170_v20, 2 }
 0x189   :  { %v168_v23 = vmax.f32 %v166_v19, %v167_v21  ;;  %v172_v24 = vmax.f32 %v170_v20, %v171_v22 }
 0x18b   :  { %vm177_vm0 = vcmp.ge.f32.partialorder %v161_v11, %v168_v23  ;;  %v173_v25 = vrot.slane %v172_v24, 1 }
 0x18c   :  { %v179_v26 = vsel %vm177_vm0, %v266_v18, 1073741824 }
 0x18d   :  { %v181_v27 = vrot.slane %v179_v26, 4  ;;  %v174_v28 = vmax.f32 %v172_v24, %v173_v25 }
 0x18f   :  { %vm182_vm2 = vcmp.lt.s32.totalorder %v179_v26, %v181_v27  ;;  %vm178_vm3 = vcmp.ge.f32.partialorder %v162_v15, %v174_v28  ;;  %v202_v29 = vsel %vm201_vm1, %v174_v28, %v168_v23 }
 0x190   :  { %v183_v30 = vsel %vm182_vm2, %v179_v26, %v181_v27  ;;  %v180_v31 = vsel %vm178_vm3, %v266_v18, 1073741824  ;;  %204 = vst [vmem:[%s290_s2] sm:$0x3] %v202_v29 }
 0x191   :  { %v184_v32 = vrot.slane %v183_v30, 2  ;;  %v190_v33 = vrot.slane %v180_v31, 4 }
 0x193   :  { %vm185_vm4 = vcmp.lt.s32.totalorder %v183_v30, %v184_v32  ;;  %vm191_vm5 = vcmp.lt.s32.totalorder %v180_v31, %v190_v33 }
 0x194   :  { %v186_v34 = vsel %vm185_vm4, %v183_v30, %v184_v32  ;;  %v192_v35 = vsel %vm191_vm5, %v180_v31, %v190_v33 }
 0x195   :  { %v187_v36 = vrot.slane %v186_v34, 1  ;;  %v193_v37 = vrot.slane %v192_v35, 2 }
 0x197   :  { %vm194_vm6 = vcmp.lt.s32.totalorder %v192_v35, %v193_v37  ;;  %vm188_vm7 = vcmp.lt.s32.totalorder %v186_v34, %v187_v36 }
 0x198   :  { %v195_v38 = vsel %vm194_vm6, %v192_v35, %v193_v37  ;;  %v189_v40 = vsel %vm188_vm7, %v186_v34, %v187_v36 }
 0x199   :  { %v196_v39 = vrot.slane %v195_v38, 1 }
 0x19b   :  { %vm197_vm8 = vcmp.lt.s32.totalorder %v195_v38, %v196_v39 }
 0x19c   :  { %v198_v41 = vsel %vm197_vm8, %v195_v38, %v196_v39 }
 0x19d   :  { %v205_v18 = vsel %vm201_vm1, %v198_v41, %v189_v40 }
 0x19e   :  { %206 = vst [vmem:[%s291_s3] sm:$0x3] %v205_v18 }

// kernel: proposal_target_creator.3
= control target key start
LH: loop header
LB: loop body
LE: loop exit
PB: predicated region body
PF: predicated region fallthrough
CT: control target
= control target key end

     0   :  { %s817_s0 = inlined_call_operand.vmem [shape: s32[8], index: 0, kind: input, shape index: {}]   ;;  %s818_s1 = inlined_call_operand.vmem [shape: f32[8,28,64], index: 1, kind: input, shape index: {}]   ;;  %s819_s2 = inlined_call_operand.vmem [shape: f32[8,64,28], index: 2, kind: input, shape index: {}]   ;;  %s820_s3 = inlined_call_operand.vmem [shape: f32[16,64,64], index: 3, kind: input, shape index: {}]   ;;  %s821_s4 = inlined_call_operand.vmem [shape: s32[8,28,28], index: 4, kind: output, shape index: {}]  }
   0x1   :  { %s9_s17 = sshll.u32 %s817_s0, 4  ;;  %s10_s17 = int_to_ptr.vmem [resolvable:$true] %s9_s17 }
   0x2   :  { %s723_s18 = scalar_lea.vmem %s10_s17, 16  ;;  %p728_p1 = scmp.lt.s32.totalorder %s10_s17, %s10_s17 }
   0x3   :  { %p724_p0 = scmp.ne.s32.totalorder %s10_s17, %s723_s18  ;;  %p729_p2 = scmp.lt.s32.totalorder %s723_s18, %s723_s18 }
   0x5   :  { %p730_p3 = por %p729_p2, %p728_p1 }
   0x7   :  { %p731_p4 = pnand %p730_p3, %p724_p0 }
   0x9   :  { %734 = shalt.err (!%p731_p4)  }
   0xa   :  { %s745_s19 = smov [#allocation3]  }
   0xb   :  { %12 = dma.vmem_to_smem %s10_s17, 16, %s745_s19, [#allocation2] }
   0xc   :  { %739 = dma.done.wait [#allocation2], 16 }
   0xd   :  { %740 = vsyncadd [#allocation2], 4294967280 }
   0xe   :  { %14 = sfence }
   0xf   :  { %s774_s20 = smov 0  }
  0x10 LB: > { %s561_s0 = sadd.s32 4294967295, %s743_s20   ;;  %p565_p5 = scmp.ge.s32.totalorder %s743_s20, 1  ;;  %s743_s20 = sphi %s774_s20, %s20_s20  }
  0x11   : > { %p168_p6 = scmp.lt.s32.totalorder %s743_s20, 9 }
  0x13   : > { %p169_p7 = pnand %p565_p5, %p168_p6 }
  0x14   : > { %p203_p8 = scmp.lt.s32.totalorder (!%p169_p7), %s561_s0, 7  ;;  %s213_s21 = sld [smem:[#allocation3 + %s561_s0]] (!%p169_p7)  ;;  %vm241_vm0 = vcmask (!%p169_p7), 523264   ;;  %vm476_vm1 = vcmask (!%p169_p7), 228352   ;;  %vm480_vm2 = vcmask (!%p169_p7), 224256  }
  0x15   : > { %172 = sbr.rel (%p169_p7) target bundleno = 501 (0x1f5), region = 32 }
  0x1a   : > { %p214_p9 = scmp.lt.s32.totalorder (!%p169_p7), %s213_s21, 15 }
  0x1c   : > { %s823_s0 = smov (!%p203_p8, %s561_s0), 7  ;;  %s825_s21 = smov (!%p214_p9, %s213_s21), 15 }
  0x1d   : > { %s589_s22 = sshll.u32 %s823_s0, 6  ;;  %s590_s26 = sshll.u32 %s825_s21, 6 }
  0x1e   : > { %s212_s25 = scalar_lea.vmem %s819_s2, %s589_s22  ;;  %s218_s29 = scalar_lea.vmem %s820_s3, %s590_s26 }
  0x1f   : > { %v233_v0 = vld [vmem:[%s212_s25] sm:$0xff]  ;;  %v234_v1 = vld [vmem:[%s212_s25 + $0x8] sm:$0xff]  ;;  %v235_v2 = vld [vmem:[%s212_s25 + $0x10] sm:$0xff]  ;;  %s588_s30 = sshll.u32 %s823_s0, 5 }
  0x20   : > { %v670_v3 = vpack.c.bf16 %v234_v1, %v233_v0  ;;  %v236_v4 = vld [vmem:[%s212_s25 + $0x18] sm:$0xff]  ;;  %v237_v6 = vld [vmem:[%s212_s25 + $0x20] sm:$0xff]  ;;  %v238_v7 = vld [vmem:[%s212_s25 + $0x28] sm:$0xff]  ;;  %s207_s7 = scalar_lea.vmem %s818_s1, %s588_s30  ;;  %s224_s10 = scalar_lea.vmem %s821_s4, %s588_s30 }
  0x21   : > { %v674_v5 = vpack.c.bf16 %v236_v4, %v235_v2  ;;  %v678_v8 = vpack.c.bf16 %v238_v7, %v237_v6  ;;  %v239_v9 = vld [vmem:[%s212_s25 + $0x30] sm:$0xff]  ;;  %v240_v10 = vld [vmem:[%s212_s25 + $0x38] sm:$0xff]  ;;  %v225_v11 = vld [vmem:[%s218_s29] sm:$0xff] }
  0x22   : > { %671 = vmatprep.subr.bf16.mxu0 %v670_v3  ;;  %636 = vmatprep.mubr.msk.f32.mxu0 %vm241_vm0, %v225_v11  ;;  %v682_v12 = vpack.c.bf16 %v240_v10, %v239_v9  ;;  %v226_v13 = vld [vmem:[%s218_s29 + $0x8] sm:$0xff]  ;;  %v227_v14 = vld [vmem:[%s218_s29 + $0x10] sm:$0xff]  ;;  %v228_v15 = vld [vmem:[%s218_s29 + $0x18] sm:$0xff] }
  0x23   : > { %673 = vmatpush3.bf16.msra.mxu0 %v670_v3  ;;  %v229_v16 = vld [vmem:[%s218_s29 + $0x20] sm:$0xff]  ;;  %v230_v17 = vld [vmem:[%s218_s29 + $0x28] sm:$0xff]  ;;  %v231_v18 = vld [vmem:[%s218_s29 + $0x30] sm:$0xff] }
  0x24   : > { %675 = vmatprep.subr.bf16.mxu0 %v674_v5  ;;  %v232_v19 = vld [vmem:[%s218_s29 + $0x38] sm:$0xff]  ;;  %v371_v20 = vld [vmem:[%s207_s7] sm:$0xff]  ;;  %v372_v33 = vld [vmem:[%s207_s7 + $0x8] sm:$0xff] }
  0x25   : > { %664 = vmatprep.mubr.msk.f32.mxu1 %vm241_vm0, %v371_v20  ;;  %v373_v34 = vld [vmem:[%s207_s7 + $0x10] sm:$0xff]  ;;  %v374_v35 = vld [vmem:[%s207_s7 + $0x18] sm:$0xf] }
  0x27   : > { %677 = vmatpush3.bf16.msra.mxu0 %v674_v5 }
  0x28   : > { %679 = vmatprep.subr.bf16.mxu0 %v678_v8 }
  0x2b   : > { %681 = vmatpush3.bf16.msra.mxu0 %v678_v8 }
  0x2c   : > { %683 = vmatprep.subr.bf16.mxu0 %v682_v12 }
  0x2f   : > { %685 = vmatpush3.bf16.msra.mxu0 %v682_v12 }
  0x32   : > { %637 = vmatmul.mubr.msk.f32.vlgmr.msra.gmra.mrb[0].mxu0 %vm241_vm0, %v226_v13 }
  0x33   : > { %639 = vmatprep.mubr.msk.f32.mxu0 %vm241_vm0, %v227_v14 }
  0x36   : > { %640 = vmatmul.mubr.msk.f32.gmra.mrb[2].mxu0 %vm241_vm0, %v228_v15 }
  0x37   : > { %642 = vmatprep.mubr.msk.f32.mxu0 %vm241_vm0, %v229_v16 }
  0x3a   : > { %643 = vmatmul.mubr.msk.f32.gmra.mrb[4].mxu0 %vm241_vm0, %v230_v17 }
  0x3b   : > { %645 = vmatprep.mubr.msk.f32.mxu0 %vm241_vm0, %v231_v18 }
  0x3e   : > { %646 = vmatmul.mubr.msk.f32.gmra.mrb[6].mxu0 %vm241_vm0, %v232_v19 }
 0x105   : > { %v638_v21 = vpop.f32.mrb[0].mxu0 }
 0x106   : > { %v332_v22 = vpop.f32.mrb[1].mxu0 }
 0x107   : > { %v686_v23 = vpack.c.bf16 %v638_v21, %v332_v22 }
 0x109   : > { %v641_v24 = vpop.f32.mrb[2].mxu0  ;;  %687 = vmatprep.subr.bf16.mxu1 %v686_v23 }
 0x10a   : > { %v342_v25 = vpop.f32.mrb[3].mxu0  ;;  %689 = vmatpush3.bf16.msra.mxu1 %v686_v23 }
 0x10b   : > { %v690_v26 = vpack.c.bf16 %v641_v24, %v342_v25 }
 0x10d   : > { %v644_v27 = vpop.f32.mrb[4].mxu0  ;;  %691 = vmatprep.subr.bf16.mxu1 %v690_v26 }
 0x10e   : > { %v352_v28 = vpop.f32.mrb[5].mxu0  ;;  %693 = vmatpush3.bf16.msra.mxu1 %v690_v26 }
 0x10f   : > { %v694_v29 = vpack.c.bf16 %v644_v27, %v352_v28 }
 0x111   : > { %v647_v30 = vpop.f32.mrb[6].mxu0  ;;  %695 = vmatprep.subr.bf16.mxu1 %v694_v29 }
 0x112   : > { %v362_v31 = vpop.f32.mrb[7].mxu0  ;;  %697 = vmatpush3.bf16.msra.mxu1 %v694_v29 }
 0x113   : > { %v698_v32 = vpack.c.bf16 %v647_v30, %v362_v31 }
 0x115   : > { %699 = vmatprep.subr.bf16.mxu1 %v698_v32 }
 0x116   : > { %701 = vmatpush3.bf16.msra.mxu1 %v698_v32 }
 0x119   : > { %665 = vmatmul.mubr.msk.f32.vlgmr.msra.gmra.mrb[0].mxu1 %vm241_vm0, %v372_v33 }
 0x11a   : > { %667 = vmatprep.mubr.msk.f32.mxu1 %vm241_vm0, %v373_v34 }
 0x11d   : > { %668 = vmatmul.mubr.msk.f32.gmra.mrb[2].mxu1 %vm241_vm0, %v374_v35 }
 0x1ec   : > { %v666_v36 = vpop.f32.mrb[0].mxu1 }
 0x1ed   : > { %v707_v37 = vcvt.f32.s32 %v666_v36  ;;  %v453_v38 = vpop.f32.mrb[1].mxu1 }
 0x1ee   : > { %v704_v39 = vcvt.f32.s32 %v453_v38 }
 0x1ef   : > { %478 = vst.msk [vmem:[%s224_s10 + $0x8] sm:$0xff] %vm476_vm1, %v707_v37 }
 0x1f0   : > { %477 = vst.msk [vmem:[%s224_s10] sm:$0xff] %vm476_vm1, %v704_v39  ;;  %v669_v40 = vpop.f32.mrb[2].mxu1 }
 0x1f1   : > { %v713_v41 = vcvt.f32.s32 %v669_v40  ;;  %v463_v42 = vpop.f32.mrb[3].mxu1 }
 0x1f2   : > { %v710_v43 = vcvt.f32.s32 %v463_v42 }
 0x1f3   : > { %481 = vst.msk [vmem:[%s224_s10 + $0x18] sm:$0xf] %vm480_vm2, %v713_v41 }
 0x1f4   : > { %479 = vst.msk [vmem:[%s224_s10 + $0x10] sm:$0xff] %vm476_vm1, %v710_v43 }
 0x1f5 PF: > { %s20_s20 = sadd.s32 1, %s743_s20  }
 0x1f6   : > { %p17_p10 = scmp.ge.s32.totalorder %s20_s20, 10  }
 0x1f8   :  { %19 = sbr.rel (!%p17_p10) target bundleno = 16 (0x10), region = 68 }

</bundles_post_ra>
